<compile_context>
chip_gen: v7x
topology: tpu7x:2x2x1
jax: 0.10.0
libtpu: 0.0.40
codegen_flags: <defaults>
</compile_context>

<pallas_src>
import jax
import jax.numpy as jnp
from jax.experimental import pallas as pl
from jax.experimental.pallas import tpu as pltpu

HIDDEN = 512
N_GENDER = 2
N_AGE = 8
N_OUT = N_GENDER + N_AGE          # fused head width
MAX_TILE_B = 2048                 # f32 rows; 8 MiB double-buffered, fits v5e default VMEM


def _fused_heads_kernel(x_ref, w_ref, b_ref, out_ref):
    """Fused multi-task head: one MXU matmul for both linear heads.

    x_ref:   (TILE_B, 512)  f32 embeddings tile (streamed)
    w_ref:   (512, 10)      f32 fused weight [gender | age] (VMEM-resident)
    b_ref:   (1, 10)        f32 fused bias (VMEM-resident)
    out_ref: (TILE_B, 10)   f32 fused logits tile
    """
    out_ref[...] = (
        jnp.dot(x_ref[...], w_ref[...], preferred_element_type=jnp.float32)
        + b_ref[...]
    )


def _round_up(a, m):
    return (a + m - 1) // m * m


def _choose_tiling(batch):
    """Balanced batch tiles; even tile count for multi-tile batches (v7x megacore)."""
    num_tiles = pl.cdiv(batch, MAX_TILE_B)
    if num_tiles > 1 and num_tiles % 2 == 1:
        num_tiles += 1
    tile_b = _round_up(pl.cdiv(batch, num_tiles), 8)
    grid_b = pl.cdiv(batch, tile_b)
    return tile_b, grid_b


def fuse_head_params(wg, bg, wa, ba):
    """Build the fused (512, 10) weight and (1, 10) bias ONCE (hoisted out of forward)."""
    w = jnp.concatenate([wg, wa], axis=1).astype(jnp.float32)                 # (512, 10)
    b = jnp.concatenate(
        [bg.reshape(1, N_GENDER), ba.reshape(1, N_AGE)], axis=1
    ).astype(jnp.float32)                                                     # (1, 10)
    return w, b


@jax.jit
def multi_task_forward(x, w_fused, b_fused):
    """(B, 512) f32 embeddings -> ((B, 2) gender logits, (B, 8) age logits)."""
    B, D = x.shape
    assert D == HIDDEN

    tile_b, grid_b = _choose_tiling(B)

    cost = pl.CostEstimate(
        flops=2 * B * D * N_OUT,
        transcendentals=0,
        bytes_accessed=(B * D * 4) + (w_fused.size * 4) + (b_fused.size * 4)
        + (B * N_OUT * 4),
    )

    fused = pl.pallas_call(
        _fused_heads_kernel,
        out_shape=jax.ShapeDtypeStruct((B, N_OUT), jnp.float32),
        grid_spec=pltpu.PrefetchScalarGridSpec(
            num_scalar_prefetch=0,
            grid=(grid_b,),
            in_specs=[
                pl.BlockSpec((tile_b, D), lambda i: (i, 0)),      # x: streamed f32
                pl.BlockSpec((D, N_OUT), lambda i: (0, 0)),       # fused W: resident
                pl.BlockSpec((1, N_OUT), lambda i: (0, 0)),       # fused bias: resident
            ],
            out_specs=pl.BlockSpec((tile_b, N_OUT), lambda i: (i, 0)),
        ),
        compiler_params=pltpu.CompilerParams(
            dimension_semantics=("parallel",),
        ),
        cost_estimate=cost,
    )(x, w_fused, b_fused)

    return fused[:, :N_GENDER], fused[:, N_GENDER:N_OUT]


def init_params(key, hidden=HIDDEN, n_gender=N_GENDER, n_age=N_AGE):
    """Deterministic synthetic init (shapes match nn.Linear(512, 2) / nn.Linear(512, 8))."""
    k1, k2, k3, k4 = jax.random.split(key, 4)
    bound = 1.0 / jnp.sqrt(hidden)
    wg = jax.random.uniform(k1, (hidden, n_gender), jnp.float32, -bound, bound)
    bg = jax.random.uniform(k2, (1, n_gender), jnp.float32, -bound, bound)
    wa = jax.random.uniform(k3, (hidden, n_age), jnp.float32, -bound, bound)
    ba = jax.random.uniform(k4, (1, n_age), jnp.float32, -bound, bound)
    return wg, bg, wa, ba


def _check(x, wg, bg, wa, ba, w_fused, b_fused):
    gender_out, age_out = multi_task_forward(x, w_fused, b_fused)
    jax.block_until_ready((gender_out, age_out))
    # Pure-JAX f32 reference (dropout is identity in eval mode).
    gender_ref = x @ wg + bg
    age_ref = x @ wa + ba
    assert gender_out.shape == gender_ref.shape
    assert age_out.shape == age_ref.shape
    assert jnp.allclose(gender_out, gender_ref, atol=1e-2, rtol=1e-2)
    assert jnp.allclose(age_out, age_ref, atol=1e-2, rtol=1e-2)


if __name__ == "__main__":
    key = jax.random.PRNGKey(0)
    k_x, k_p, k_x2 = jax.random.split(key, 3)

    wg, bg, wa, ba = init_params(k_p)
    # Fused head params built once, outside the per-call forward.
    w_fused, b_fused = fuse_head_params(wg, bg, wa, ba)

    # Small batch (spec-sized example): single partial tile (block > batch rows).
    B_SMALL = 2
    x_small = jax.random.normal(k_x, (B_SMALL, HIDDEN), dtype=jnp.float32)
    _check(x_small, wg, bg, wa, ba, w_fused, b_fused)

    # Larger, non-tile-multiple batch: exercises the balanced multi-tile grid
    # (even tile count) plus a partial final block handled by Pallas.
    B_BIG = 2500
    x_big = jax.random.normal(k_x2, (B_BIG, HIDDEN), dtype=jnp.float32)
    _check(x_big, wg, bg, wa, ba, w_fused, b_fused)

    print("KERNEL_OK")
</pallas_src>

<mosaic_0001>
module attributes {stable_mosaic.version = 11 : i64} {
  func.func @_fused_heads_kernel(%arg0: i32, %arg1: memref<8x512xf32, #tpu.memory_space<vmem>>, %arg2: memref<512x10xf32, #tpu.memory_space<vmem>>, %arg3: memref<1x10xf32, #tpu.memory_space<vmem>>, %arg4: memref<8x10xf32, #tpu.memory_space<vmem>>) attributes {dimension_semantics = [#tpu.dimension_semantics<parallel>], iteration_bounds = array<i64: 1>, scalar_prefetch = 0 : i64, scratch_operands = 0 : i64, tpu.core_type = #tpu.core_type<tc>, window_params = [{transform_indices = @transform_0, window_bounds = array<i64: 8, 512>}, {pipeline_mode = #tpu.pipeline_mode<synchronous>, transform_indices = @transform_1, window_bounds = array<i64: 512, 10>}, {pipeline_mode = #tpu.pipeline_mode<synchronous>, transform_indices = @transform_2, window_bounds = array<i64: 1, 10>}, {transform_indices = @transform_3, window_bounds = array<i64: 8, 10>}]} {
    %c0 = arith.constant 0 : index
    %c0_0 = arith.constant 0 : index
    %0 = vector.load %arg1[%c0, %c0_0] : memref<8x512xf32, #tpu.memory_space<vmem>>, vector<8x512xf32>
    %c0_1 = arith.constant 0 : index
    %c0_2 = arith.constant 0 : index
    %1 = vector.load %arg2[%c0_1, %c0_2] : memref<512x10xf32, #tpu.memory_space<vmem>>, vector<512x10xf32>
    %cst = arith.constant dense<0.000000e+00> : vector<8x10xf32>
    %2 = tpu.matmul %0, %1, %cst {dimension_numbers = #tpu.dot_dimension_numbers<[1], [0], [0], [1], [0, 0, 1, 1], [], []>} : vector<8x512xf32>, vector<512x10xf32>, vector<8x10xf32> -> vector<8x10xf32>
    %c0_3 = arith.constant 0 : index
    %c0_4 = arith.constant 0 : index
    %3 = vector.load %arg3[%c0_3, %c0_4] : memref<1x10xf32, #tpu.memory_space<vmem>>, vector<1x10xf32>
    %4 = vector.broadcast %3 : vector<1x10xf32> to vector<8x10xf32>
    %5 = arith.addf %2, %4 : vector<8x10xf32>
    %c0_5 = arith.constant 0 : index
    %c0_6 = arith.constant 0 : index
    %6 = vector.load %arg4[%c0_5, %c0_6] : memref<8x10xf32, #tpu.memory_space<vmem>>, vector<8x10xf32>
    tpu.vector_store %arg4[%c0_5, %c0_6], %5 {strides = array<i32>} : memref<8x10xf32, #tpu.memory_space<vmem>>, vector<8x10xf32>,
    return
  }
  func.func @transform_0(%arg0: i32) -> (i32, i32) {
    %c0_i32 = arith.constant 0 : i32
    %c0_i32_0 = arith.constant 0 : i32
    return %arg0, %c0_i32 : i32, i32
  }
  func.func @transform_1(%arg0: i32) -> (i32, i32) {
    %c0_i32 = arith.constant 0 : i32
    %c0_i32_0 = arith.constant 0 : i32
    %c0_i32_1 = arith.constant 0 : i32
    return %c0_i32, %c0_i32_0 : i32, i32
  }
  func.func @transform_2(%arg0: i32) -> (i32, i32) {
    %c0_i32 = arith.constant 0 : i32
    %c0_i32_0 = arith.constant 0 : i32
    %c0_i32_1 = arith.constant 0 : i32
    return %c0_i32, %c0_i32_0 : i32, i32
  }
  func.func @transform_3(%arg0: i32) -> (i32, i32) {
    %c0_i32 = arith.constant 0 : i32
    %c0_i32_0 = arith.constant 0 : i32
    return %arg0, %c0_i32 : i32, i32
  }
}

</mosaic_0001>

<bundles_post_ra>
// kernel: multi_task_forward.1
= control target key start
LH: loop header
LB: loop body
LE: loop exit
PB: predicated region body
PF: predicated region fallthrough
CT: control target
= control target key end

     0   :  { %v456_v51 = vmov 1983009808   ;;  %v100_v53 = vlaneseq  ;;  %vm273_vm0 = vcmask 80896   ;;  %s687_s0 = inlined_call_operand.vmem [shape: f32[2,512], index: 0, kind: input, shape index: {}]   ;;  %s688_s1 = inlined_call_operand.vmem [shape: f32[512,10], index: 1, kind: input, shape index: {}]   ;;  %s689_s2 = inlined_call_operand.vmem [shape: f32[1,10], index: 2, kind: input, shape index: {}]   ;;  %s690_s3 = inlined_call_operand.vmem [shape: f32[2,10], index: 3, kind: output, shape index: {}]  }
   0x1   :  { %v34_v0 = vld [vmem:[%s688_s1 + $0x80] sm:$0xff]  ;;  %v35_v1 = vld [vmem:[%s688_s1 + $0x88] sm:$0xff]  ;;  %v36_v11 = vld [vmem:[%s688_s1 + $0x90] sm:$0xff]  ;;  %v98_v52 = vunpack.c.l.s4 %v456_v51 }
   0x2   :  { %v18_v2 = vld [vmem:[%s688_s1] sm:$0xff]  ;;  %v385_v3 = vpack.c.bf16 %v35_v1, %v34_v0  ;;  %v19_v4 = vld [vmem:[%s688_s1 + $0x8] sm:$0xff]  ;;  %v37_v13 = vld [vmem:[%s688_s1 + $0x98] sm:$0xff] }
   0x3   :  { %v66_v5 = vld [vmem:[%s688_s1 + $0x180] sm:$0xff]  ;;  %v67_v6 = vld [vmem:[%s688_s1 + $0x188] sm:$0xff]  ;;  %v387_v7 = vpack.c.bf16 %v19_v4, %v18_v2  ;;  %v20_v14 = vld [vmem:[%s688_s1 + $0x10] sm:$0xff]  ;;  %v389_v16 = vpack.c.bf16 %v37_v13, %v36_v11  ;;  %v99_v2 = vunpack.c.0.s8 %v98_v52 }
   0x4   :  { %v417_v8 = vpack.c.bf16 %v67_v6, %v66_v5  ;;  %v50_v9 = vld [vmem:[%s688_s1 + $0x100] sm:$0xff]  ;;  %v51_v10 = vld [vmem:[%s688_s1 + $0x108] sm:$0xff]  ;;  %386 = vmatprep.subr.bf16.mxu0 %v385_v3  ;;  %v21_v15 = vld [vmem:[%s688_s1 + $0x18] sm:$0xff]  ;;  %v101_v3 = vshrl.u32 %v100_v53, 7 }
   0x5   :  { %v419_v12 = vpack.c.bf16 %v51_v10, %v50_v9  ;;  %388 = vmatpush3.bf16.msra.mxu0 %v387_v7  ;;  %v391_v17 = vpack.c.bf16 %v21_v15, %v20_v14  ;;  %v68_v18 = vld [vmem:[%s688_s1 + $0x190] sm:$0xff]  ;;  %v69_v19 = vld [vmem:[%s688_s1 + $0x198] sm:$0xff]  ;;  %v38_v23 = vld [vmem:[%s688_s1 + $0xa0] sm:$0xff] }
   0x6   :  { %418 = vmatprep.subr.bf16.mxu1 %v417_v8  ;;  %v52_v20 = vld [vmem:[%s688_s1 + $0x110] sm:$0xff]  ;;  %v421_v21 = vpack.c.bf16 %v69_v19, %v68_v18  ;;  %v53_v22 = vld [vmem:[%s688_s1 + $0x118] sm:$0xff]  ;;  %v39_v24 = vld [vmem:[%s688_s1 + $0xa8] sm:$0xff]  ;;  %390 = vmatprep.subr.bf16.mxu0 %v389_v16 }
   0x7   :  { %420 = vmatpush3.bf16.msra.mxu1 %v419_v12  ;;  %v423_v25 = vpack.c.bf16 %v53_v22, %v52_v20  ;;  %v393_v26 = vpack.c.bf16 %v39_v24, %v38_v23  ;;  %v22_v27 = vld [vmem:[%s688_s1 + $0x20] sm:$0xff]  ;;  %v23_v28 = vld [vmem:[%s688_s1 + $0x28] sm:$0xff]  ;;  %v40_v35 = vld [vmem:[%s688_s1 + $0xb0] sm:$0xff]  ;;  %v102_v22 = vsub.s32 %v99_v2, %v101_v3 }
   0x8   :  { %v70_v29 = vld [vmem:[%s688_s1 + $0x1a0] sm:$0xff]  ;;  %422 = vmatprep.subr.bf16.mxu1 %v421_v21  ;;  %v71_v30 = vld [vmem:[%s688_s1 + $0x1a8] sm:$0xff]  ;;  %v395_v33 = vpack.c.bf16 %v23_v28, %v22_v27  ;;  %v41_v36 = vld [vmem:[%s688_s1 + $0xb8] sm:$0xff] }
   0x9   :  { %v54_v31 = vld [vmem:[%s688_s1 + $0x120] sm:$0xff]  ;;  %v55_v32 = vld [vmem:[%s688_s1 + $0x128] sm:$0xff]  ;;  %392 = vmatpush3.bf16.msra.mxu0 %v391_v17  ;;  %v425_v34 = vpack.c.bf16 %v71_v30, %v70_v29  ;;  %v24_v37 = vld [vmem:[%s688_s1 + $0x30] sm:$0xff]  ;;  %v397_v39 = vpack.c.bf16 %v41_v36, %v40_v35 }
   0xa   :  { %394 = vmatprep.subr.bf16.mxu0 %v393_v26  ;;  %v427_v38 = vpack.c.bf16 %v55_v32, %v54_v31  ;;  %v25_v40 = vld [vmem:[%s688_s1 + $0x38] sm:$0xff]  ;;  %v72_v41 = vld [vmem:[%s688_s1 + $0x1b0] sm:$0xff]  ;;  %v42_v46 = vld [vmem:[%s688_s1 + $0xc0] sm:$0xff] }
   0xb   :  { %424 = vmatpush3.bf16.msra.mxu1 %v423_v25  ;;  %v73_v42 = vld [vmem:[%s688_s1 + $0x1b8] sm:$0xff]  ;;  %v56_v44 = vld [vmem:[%s688_s1 + $0x130] sm:$0xff]  ;;  %v43_v47 = vld [vmem:[%s688_s1 + $0xc8] sm:$0xff]  ;;  %v399_v48 = vpack.c.bf16 %v25_v40, %v24_v37 }
   0xc   :  { %426 = vmatprep.subr.bf16.mxu1 %v425_v34  ;;  %v429_v43 = vpack.c.bf16 %v73_v42, %v72_v41  ;;  %v57_v45 = vld [vmem:[%s688_s1 + $0x138] sm:$0xff]  ;;  %v74_v49 = vld [vmem:[%s688_s1 + $0x1c0] sm:$0xff]  ;;  %v75_v50 = vld [vmem:[%s688_s1 + $0x1c8] sm:$0xff]  ;;  %v401_v55 = vpack.c.bf16 %v43_v47, %v42_v46 }
   0xd   :  { %396 = vmatpush3.bf16.msra.mxu0 %v395_v33  ;;  %v431_v54 = vpack.c.bf16 %v57_v45, %v56_v44  ;;  %v26_v56 = vld [vmem:[%s688_s1 + $0x40] sm:$0xff]  ;;  %v27_v57 = vld [vmem:[%s688_s1 + $0x48] sm:$0xff]  ;;  %v433_v59 = vpack.c.bf16 %v75_v50, %v74_v49  ;;  %v44_v61 = vld [vmem:[%s688_s1 + $0xd0] sm:$0xff] }
   0xe   :  { %398 = vmatprep.subr.bf16.mxu0 %v397_v39  ;;  %v58_v58 = vld [vmem:[%s688_s1 + $0x140] sm:$0xff]  ;;  %v59_v60 = vld [vmem:[%s688_s1 + $0x148] sm:$0xff]  ;;  %v45_v62 = vld [vmem:[%s688_s1 + $0xd8] sm:$0xff]  ;;  %v403_v1 = vpack.c.bf16 %v27_v57, %v26_v56 }
   0xf   :  { %428 = vmatpush3.bf16.msra.mxu1 %v427_v38  ;;  %v76_v63 = vld [vmem:[%s688_s1 + $0x1d0] sm:$0xff]  ;;  %v77_v0 = vld [vmem:[%s688_s1 + $0x1d8] sm:$0xff]  ;;  %v435_v4 = vpack.c.bf16 %v59_v60, %v58_v58  ;;  %v405_v5 = vpack.c.bf16 %v45_v62, %v44_v61  ;;  %v46_v11 = vld [vmem:[%s688_s1 + $0xe0] sm:$0xff] }
  0x10   :  { %430 = vmatprep.subr.bf16.mxu1 %v429_v43  ;;  %v28_v6 = vld [vmem:[%s688_s1 + $0x50] sm:$0xff]  ;;  %v29_v7 = vld [vmem:[%s688_s1 + $0x58] sm:$0xff]  ;;  %v437_v9 = vpack.c.bf16 %v77_v0, %v76_v63  ;;  %v47_v12 = vld [vmem:[%s688_s1 + $0xe8] sm:$0xff] }
  0x11   :  { %400 = vmatpush3.bf16.msra.mxu0 %v399_v48  ;;  %v60_v8 = vld [vmem:[%s688_s1 + $0x150] sm:$0xff]  ;;  %v61_v10 = vld [vmem:[%s688_s1 + $0x158] sm:$0xff]  ;;  %v30_v13 = vld [vmem:[%s688_s1 + $0x60] sm:$0xff]  ;;  %v407_v18 = vpack.c.bf16 %v29_v7, %v28_v6  ;;  %v409_v24 = vpack.c.bf16 %v47_v12, %v46_v11 }
  0x12   :  { %402 = vmatprep.subr.bf16.mxu0 %v401_v55  ;;  %v31_v14 = vld [vmem:[%s688_s1 + $0x68] sm:$0xff]  ;;  %v78_v15 = vld [vmem:[%s688_s1 + $0x1e0] sm:$0xff]  ;;  %v48_v20 = vld [vmem:[%s688_s1 + $0xf0] sm:$0xff]  ;;  %v439_v23 = vpack.c.bf16 %v61_v10, %v60_v8 }
  0x13   :  { %432 = vmatpush3.bf16.msra.mxu1 %v431_v54  ;;  %v79_v16 = vld [vmem:[%s688_s1 + $0x1e8] sm:$0xff]  ;;  %v62_v17 = vld [vmem:[%s688_s1 + $0x160] sm:$0xff]  ;;  %v49_v21 = vld [vmem:[%s688_s1 + $0xf8] sm:$0xff]  ;;  %v411_v32 = vpack.c.bf16 %v31_v14, %v30_v13 }
  0x14   :  { %434 = vmatprep.subr.bf16.mxu1 %v433_v59  ;;  %v63_v19 = vld [vmem:[%s688_s1 + $0x168] sm:$0xff]  ;;  %v80_v25 = vld [vmem:[%s688_s1 + $0x1f0] sm:$0xff]  ;;  %v81_v26 = vld [vmem:[%s688_s1 + $0x1f8] sm:$0xff]  ;;  %v441_v27 = vpack.c.bf16 %v79_v16, %v78_v15  ;;  %v413_v34 = vpack.c.bf16 %v49_v21, %v48_v20 }
  0x15   :  { %404 = vmatpush3.bf16.msra.mxu0 %v403_v1  ;;  %v450_v28 = vld [vmem:[%s687_s0] ss:$8 sps:$4 sm:$0xff]   ;;  %v452_v29 = vld [vmem:[%s687_s0 + $0x10] ss:$8 sps:$4 sm:$0xff]   ;;  %v454_v30 = vld [vmem:[%s687_s0 + $0x4] ss:$8 sps:$4 sm:$0xff]   ;;  %v443_v33 = vpack.c.bf16 %v63_v19, %v62_v17  ;;  %v445_v41 = vpack.c.bf16 %v81_v26, %v80_v25 }
  0x16   :  { %406 = vmatprep.subr.bf16.mxu0 %v405_v5  ;;  %v455_v31 = vld [vmem:[%s687_s0 + $0x14] ss:$8 sps:$4 sm:$0xff]   ;;  %v103_v35 = vrot.slane %v450_v28, %v102_v22  ;;  %v117_v38 = vrot.slane %v452_v29, %v102_v22  ;;  %v110_v39 = vrot.slane %v454_v30, %v102_v22  ;;  %v314_v51 = vld [vmem:[%s689_s2] ss:$0 sm:$0xff] }
  0x17   :  { %436 = vmatpush3.bf16.msra.mxu1 %v435_v4  ;;  %v32_v36 = vld [vmem:[%s688_s1 + $0x70] sm:$0xff]  ;;  %v33_v37 = vld [vmem:[%s688_s1 + $0x78] sm:$0xff]  ;;  %v124_v40 = vrot.slane %v455_v31, %v102_v22 }
  0x18   :  { %438 = vmatprep.subr.bf16.mxu1 %v437_v9  ;;  %v64_v42 = vld [vmem:[%s688_s1 + $0x170] sm:$0xff]  ;;  %v65_v43 = vld [vmem:[%s688_s1 + $0x178] sm:$0xff]  ;;  %v126_v44 = vcombine.high %v103_v35, %v117_v38  ;;  %v415_v46 = vpack.c.bf16 %v33_v37, %v32_v36  ;;  %v125_v48 = vcombine.low %v103_v35, %v117_v38 }
  0x19   :  { %408 = vmatpush3.bf16.msra.mxu0 %v407_v18  ;;  %v128_v45 = vcombine.high %v110_v39, %v124_v40  ;;  %v447_v47 = vpack.c.bf16 %v65_v43, %v64_v42  ;;  %v127_v49 = vcombine.low %v110_v39, %v124_v40 }
  0x1a   :  { %410 = vmatprep.subr.bf16.mxu0 %v409_v24  ;;  %197 = vmatprep.mubr.f32.mxu0 %v126_v44 }
  0x1b   :  { %440 = vmatpush3.bf16.msra.mxu1 %v439_v23  ;;  %267 = vmatprep.mubr.f32.mxu1 %v128_v45 }
  0x1c   :  { %442 = vmatprep.subr.bf16.mxu1 %v441_v27 }
  0x1d   :  { %412 = vmatpush3.bf16.msra.mxu0 %v411_v32 }
  0x1e   :  { %414 = vmatprep.subr.bf16.mxu0 %v413_v34 }
  0x1f   :  { %444 = vmatpush3.bf16.msra.mxu1 %v443_v33 }
  0x20   :  { %446 = vmatprep.subr.bf16.mxu1 %v445_v41 }
  0x21   :  { %416 = vmatpush3.bf16.msra.mxu0 %v415_v46 }
  0x23   :  { %448 = vmatpush3.bf16.msra.mxu1 %v447_v47 }
  0x24   :  { %198 = vmatmul.mubr.f32.vlgmr.msra.gmra.mrb[0].mxu0 %v125_v48 }
  0x26   :  { %268 = vmatmul.mubr.f32.vlgmr.msra.gmra.mrb[0].mxu1 %v127_v49 }
  0xf7   :  { %v347_v50 = vpop.f32.mrb[0].mxu0 }
  0xf8   :  { %v348_v52 = vpop.f32.mrb[1].mxu0 }
  0xf9   :  { %v382_v53 = vpop.f32.mrb[0].mxu1  ;;  %v349_v54 = vadd.f32 %v348_v52, %v347_v50 }
  0xfa   :  { %v383_v55 = vpop.f32.mrb[1].mxu1 }
  0xfb   :  { %v384_v56 = vadd.f32 %v383_v55, %v382_v53  ;;  %v200_v57 = vadd.f32 %v349_v54, %v314_v51 }
  0xfd   :  { %v270_v58 = vadd.f32 %v384_v56, %v200_v57 }
  0xff   :  { %274 = vst.msk [vmem:[#allocation2] sm:$0xff] %vm273_vm0, %v270_v58 }
 0x106   :  { %v292_v59 = vld [vmem:[#allocation2] sm:$0x3] }
 0x107   :  { %293 = vst [vmem:[%s690_s3] sm:$0x3] %v292_v59 }

</bundles_post_ra>
